<compile_context>
chip_gen: v6e
topology: v6e:2x2x1
jax: 0.10.0
libtpu: 0.0.40
codegen_flags: <defaults>
</compile_context>

<pallas_src>
import functools

import jax
import jax.numpy as jnp
from jax import lax
from jax.experimental import pallas as pl
from jax.experimental.pallas import tpu as pltpu

_VMEM_LIMIT = 32 * 1024 * 1024


def _round_up(a, m):
    return (a + m - 1) // m * m


# ----------------------------- Pallas kernels ------------------------------

def _linear_kernel(x_ref, wt_ref, b_ref, o_ref):
    acc = jnp.dot(x_ref[...], wt_ref[...], preferred_element_type=jnp.float32)
    o_ref[...] = (acc + b_ref[...]).astype(o_ref.dtype)


def linear(x2d, w, b=None, out_dtype=jnp.bfloat16, block_rows=256):
    """x2d: (rows, in_f); w: (out_f, in_f) torch nn.Linear layout; b: (out_f,) or None."""
    rows, in_f = x2d.shape
    out_f = w.shape[0]
    wt = jnp.asarray(w, jnp.float32).T.astype(jnp.bfloat16)            # (in_f, out_f)
    b2 = (jnp.zeros((1, out_f), jnp.float32) if b is None
          else jnp.asarray(b, jnp.float32).reshape(1, out_f))
    tm = block_rows if rows >= block_rows else _round_up(rows, 8)
    rows_p = _round_up(rows, tm)
    xp = x2d.astype(jnp.bfloat16)
    if rows_p != rows:
        xp = jnp.pad(xp, ((0, rows_p - rows), (0, 0)))
    out = pl.pallas_call(
        _linear_kernel,
        out_shape=jax.ShapeDtypeStruct((rows_p, out_f), out_dtype),
        grid=(rows_p // tm,),
        in_specs=[
            pl.BlockSpec((tm, in_f), lambda i: (i, 0)),
            pl.BlockSpec((in_f, out_f), lambda i: (0, 0)),   # weight stays resident
            pl.BlockSpec((1, out_f), lambda i: (0, 0)),
        ],
        out_specs=pl.BlockSpec((tm, out_f), lambda i: (i, 0)),
        compiler_params=pltpu.CompilerParams(
            dimension_semantics=("parallel",),
            vmem_limit_bytes=_VMEM_LIMIT),
    )(xp, wt, b2)
    return out if rows_p == rows else out[:rows]


def _local_attn_kernel(q_ref, kg_ref, vg_ref, k_ref, v_ref, bias_ref, o_ref,
                       *, my, mx):
    """One chunk-row of queries per program.

    q_ref:   (1, 1, my, W2, M)  bf16   queries (scale already folded into Wq)
    kg/vg:   (1, nglo, M)       bf16   global keys / values (resident per b)
    k/v_ref: (1, mx, my*W2, M)  bf16   full per-head local K/V, row-flattened (resident per b)
    bias:    (1, my, 3, my*W2)  f32    0 valid / -1e9 invalid (band + grid + pad mask)
    o_ref:   (1, 1, my, W2, M)  bf16
    """
    i = pl.program_id(1)
    kg = kg_ref[0]                               # (nglo, M)
    vg = vg_ref[0]                               # (nglo, M)
    dims = (((1,), (1,)), ((), ()))              # q @ k^T without explicit transpose

    for j in range(my):                          # static unroll over chunk columns
        q = q_ref[0, 0, j]                       # (W2, M) bf16

        # local-to-global scores (attn10) — always valid since nglo >= 1
        sg = lax.dot_general(q, kg, dims, preferred_element_type=jnp.float32)
        m = jnp.max(sg, axis=-1, keepdims=True)
        p = jnp.exp(sg - m)
        l = jnp.sum(p, axis=-1, keepdims=True)
        acc = jnp.dot(p.astype(jnp.bfloat16), vg,
                      preferred_element_type=jnp.float32)              # (W2, M)

        # three neighbouring chunk rows (band); masked columns contribute exactly 0
        for t, di in enumerate((-1, 0, 1)):
            ii = jnp.clip(i + di, 0, mx - 1)     # clamped; out-of-grid rows fully masked
            ks = k_ref[0, ii]                    # (my*W2, M) bf16
            vs = v_ref[0, ii]
            s = lax.dot_general(q, ks, dims, preferred_element_type=jnp.float32)
            s = s + bias_ref[:, j, t]            # (1, my*W2) f32 mask bias
            m_new = jnp.maximum(m, jnp.max(s, axis=-1, keepdims=True))
            alpha = jnp.exp(m - m_new)
            p = jnp.exp(s - m_new)
            l = alpha * l + jnp.sum(p, axis=-1, keepdims=True)
            acc = alpha * acc + jnp.dot(p.astype(jnp.bfloat16), vs,
                                        preferred_element_type=jnp.float32)
            m = m_new

        out = acc * pl.reciprocal(l, approx=True)
        o_ref[0, 0, j] = out.astype(o_ref.dtype)


def local_sliding_attention(q_ch, kg, vg, k_row, v_row, bias, *, mx, my):
    BH, _, _, W2, M = q_ch.shape
    Krow = my * W2
    nglo = kg.shape[1]
    kernel = functools.partial(_local_attn_kernel, my=my, mx=mx)
    return pl.pallas_call(
        kernel,
        out_shape=jax.ShapeDtypeStruct((BH, mx, my, W2, M), jnp.bfloat16),
        grid=(BH, mx),
        in_specs=[
            pl.BlockSpec((1, 1, my, W2, M), lambda b, i: (b, i, 0, 0, 0)),
            pl.BlockSpec((1, nglo, M), lambda b, i: (b, 0, 0)),
            pl.BlockSpec((1, nglo, M), lambda b, i: (b, 0, 0)),
            pl.BlockSpec((1, mx, Krow, M), lambda b, i: (b, 0, 0, 0)),  # resident per b
            pl.BlockSpec((1, mx, Krow, M), lambda b, i: (b, 0, 0, 0)),  # resident per b
            pl.BlockSpec((1, my, 3, Krow), lambda b, i: (i, 0, 0, 0)),
        ],
        out_specs=pl.BlockSpec((1, 1, my, W2, M), lambda b, i: (b, i, 0, 0, 0)),
        compiler_params=pltpu.CompilerParams(
            dimension_semantics=("parallel", "parallel"),
            vmem_limit_bytes=_VMEM_LIMIT),
    )(q_ch, kg, vg, k_row, v_row, bias)


def _global_attn_kernel(q_ref, k_ref, v_ref, o_ref):
    q = q_ref[0]                                  # (nglo, M) bf16
    k = k_ref[0]                                  # (N, M)    bf16
    v = v_ref[0]                                  # (N, M)    bf16
    s = lax.dot_general(q, k, (((1,), (1,)), ((), ())),
                        preferred_element_type=jnp.float32)            # (nglo, N)
    m = jnp.max(s, axis=-1, keepdims=True)
    p = jnp.exp(s - m)
    denom = jnp.sum(p, axis=-1, keepdims=True)
    out = jnp.dot(p.astype(v.dtype), v, preferred_element_type=jnp.float32)
    o_ref[0] = (out * pl.reciprocal(denom, approx=True)).astype(o_ref.dtype)


def global_attention(qg, kf, vf):
    # TODO(synk): for very long N, tile the key axis with an online-softmax reduction grid.
    BH, nglo, M = qg.shape
    N = kf.shape[1]
    return pl.pallas_call(
        _global_attn_kernel,
        out_shape=jax.ShapeDtypeStruct((BH, nglo, M), jnp.bfloat16),
        grid=(BH,),
        in_specs=[
            pl.BlockSpec((1, nglo, M), lambda b: (b, 0, 0)),
            pl.BlockSpec((1, N, M), lambda b: (b, 0, 0)),
            pl.BlockSpec((1, N, M), lambda b: (b, 0, 0)),
        ],
        out_specs=pl.BlockSpec((1, nglo, M), lambda b: (b, 0, 0)),
        compiler_params=pltpu.CompilerParams(
            dimension_semantics=("parallel",),
            vmem_limit_bytes=_VMEM_LIMIT),
    )(qg, kf, vf)


# ------------------------------- JAX glue -----------------------------------

def chunk2d(t, nx, ny, W):
    """(BH, Nloc, M) -> (BH, mx, my, W*W, M), zero padded to multiples of W."""
    BH, _, M = t.shape
    padx = (W - nx % W) % W
    pady = (W - ny % W) % W
    mx, my = (nx + padx) // W, (ny + pady) // W
    img = t.reshape(BH, nx, ny, M)
    img = jnp.pad(img, ((0, 0), (0, padx), (0, pady), (0, 0)))
    ch = img.reshape(BH, mx, W, my, W, M).transpose(0, 1, 3, 2, 4, 5)
    return ch.reshape(BH, mx, my, W * W, M), mx, my


def unchunk2d(ch, nx, ny, W):
    BH, mx, my, W2, M = ch.shape
    img = ch.reshape(BH, mx, my, W, W, M).transpose(0, 1, 3, 2, 4, 5)
    img = img.reshape(BH, mx * W, my * W, M)[:, :nx, :ny]
    return img.reshape(BH, nx * ny, M)


def make_band_bias(mx, my, nx, ny, W):
    """Mask bias for the band formulation, shape (mx, my, 3, my*W2).

    Entry (i, j, t, p) covers key pixel p of the chunk-row i + (t-1); it is 0 iff the
    key chunk column is within +/-1 of query chunk column j, the key chunk row is
    inside the chunk grid, and the key pixel lies inside the original (nx, ny) image
    (i.e. exactly the reference 9-neighbourhood + mask_invalid_locations semantics)."""
    W2 = W * W
    Krow = my * W2
    t = jnp.arange(Krow)
    jc = t // W2
    lx = (t % W2) // W
    ly = (t % W2) % W
    ii = jnp.arange(mx)[:, None, None, None]
    jj = jnp.arange(my)[None, :, None, None]
    di = jnp.arange(3)[None, None, :, None] - 1
    jc_b = jc[None, None, None, :]
    lx_b = lx[None, None, None, :]
    ly_b = ly[None, None, None, :]
    row = ii + di
    in_band = jnp.abs(jc_b - jj) <= 1
    in_grid = (row >= 0) & (row < mx)
    px = row * W + lx_b
    py = jc_b * W + ly_b
    valid = in_band & in_grid & (px < nx) & (py < ny)
    return jnp.where(valid, 0.0, -1e9).astype(jnp.float32)


def init_params(key, dim):
    keys = jax.random.split(key, 6)
    std = 0.02
    return dict(
        Wq=std * jax.random.normal(keys[0], (dim, dim), jnp.float32),
        Wkv=std * jax.random.normal(keys[1], (2 * dim, dim), jnp.float32),
        Wp=std * jax.random.normal(keys[2], (dim, dim), jnp.float32),
        bp=jnp.zeros((dim,), jnp.float32),
        Wqg=std * jax.random.normal(keys[3], (dim, dim), jnp.float32),
        Wkvg=std * jax.random.normal(keys[4], (2 * dim, dim), jnp.float32),
        Wpg=std * jax.random.normal(keys[5], (dim, dim), jnp.float32),
        bpg=jnp.zeros((dim,), jnp.float32),
    )


def long2dsc_self_attention(params, x, nx, ny, *, num_heads, nglo, w):
    B, N, C = x.shape
    H = num_heads
    M = C // H
    W = w
    Nloc = nx * ny
    assert nglo + Nloc == N, "Global dimension does not match!"
    assert nglo >= 1  # TODO(synk): nglo == 0 (local-only) variant not implemented.
    scale = M ** (-0.5)

    x_flat = x.reshape(B * N, C)
    x_loc_flat = x[:, nglo:].reshape(B * Nloc, C)

    # q / kv projections (tiled Pallas matmuls, qkv_bias=False, scale folded into Wq)
    q = linear(x_loc_flat, params["Wq"] * scale)                        # bf16 (B*Nloc, C)
    kv = linear(x_flat, params["Wkv"])                                  # bf16 (B*N, 2C)
    q = q.reshape(B, Nloc, H, M).transpose(0, 2, 1, 3)                  # (B, H, Nloc, M)
    kv = kv.reshape(B, N, 2, H, M).transpose(2, 0, 3, 1, 4)             # (2, B, H, N, M)
    k, v = kv[0], kv[1]

    kg = k[:, :, :nglo].reshape(B * H, nglo, M)
    vg = v[:, :, :nglo].reshape(B * H, nglo, M)
    q_loc = q.reshape(B * H, Nloc, M)
    k_loc = k[:, :, nglo:].reshape(B * H, Nloc, M)
    v_loc = v[:, :, nglo:].reshape(B * H, Nloc, M)

    # chunked layouts: queries/output keep (BH, mx, my, W2, M); keys/values use the
    # row-flattened (BH, mx, my*W2, M) layout consumed strip-wise inside the kernel.
    q_ch, mx, my = chunk2d(q_loc, nx, ny, W)
    k_ch, _, _ = chunk2d(k_loc, nx, ny, W)
    v_ch, _, _ = chunk2d(v_loc, nx, ny, W)
    W2 = W * W
    k_row = k_ch.reshape(B * H, mx, my * W2, M)
    v_row = v_ch.reshape(B * H, mx, my * W2, M)

    bias = make_band_bias(mx, my, nx, ny, W)                            # (mx, my, 3, my*W2)

    # local sliding-chunk attention (attn10 | attn11 -> softmax -> @ v) in Pallas
    x1_ch = local_sliding_attention(q_ch, kg, vg, k_row, v_row, bias, mx=mx, my=my)

    x1 = unchunk2d(x1_ch, nx, ny, W)                                    # (BH, Nloc, M) bf16
    x1 = x1.reshape(B, H, Nloc, M).transpose(0, 2, 1, 3).reshape(B * Nloc, C)
    x1 = linear(x1, params["Wp"], params["bp"],
                out_dtype=jnp.float32).reshape(B, Nloc, C)

    # global-token attention path
    x_glo_flat = x[:, :nglo].reshape(B * nglo, C)
    qg = linear(x_glo_flat, params["Wqg"] * scale)
    qg = qg.reshape(B, nglo, H, M).transpose(0, 2, 1, 3).reshape(B * H, nglo, M)
    kvg = linear(x_flat, params["Wkvg"]).reshape(B, N, 2, H, M).transpose(2, 0, 3, 1, 4)
    kgf = kvg[0].reshape(B * H, N, M)
    vgf = kvg[1].reshape(B * H, N, M)
    x0 = global_attention(qg, kgf, vgf)                                 # (BH, nglo, M) bf16
    x0 = x0.reshape(B, H, nglo, M).transpose(0, 2, 1, 3).reshape(B * nglo, C)
    x0 = linear(x0, params["Wpg"], params["bpg"],
                out_dtype=jnp.float32).reshape(B, nglo, C)

    # TODO(synk): rpe / add_pooled / only_glo / training-mode random chunk selection
    # branches are disabled in this config and not implemented.
    return jnp.concatenate([x0, x1], axis=1)


# ---------------------------------- demo ------------------------------------

if __name__ == "__main__":
    B, C, H, W = 2, 32, 4, 2          # dim=32, num_heads=4, head_dim=8, window=2
    nx = ny = 4                       # 4x4 local grid -> Nloc=16
    nglo = 1
    N = nglo + nx * ny

    key = jax.random.PRNGKey(0)
    kx, kp = jax.random.split(key)
    x = jax.random.normal(kx, (B, N, C), jnp.float32)
    params = init_params(kp, C)

    out = long2dsc_self_attention(params, x, nx, ny, num_heads=H, nglo=nglo, w=W)
    out = jax.block_until_ready(out)
    assert out.shape == (B, N, C)
    assert bool(jnp.all(jnp.isfinite(out)))
    print("KERNEL_OK")
</pallas_src>

<mosaic_0001>
module attributes {stable_mosaic.version = 11 : i64} {
  func.func @_linear_kernel(%arg0: i32, %arg1: memref<32x32xbf16, #tpu.memory_space<vmem>>, %arg2: memref<32x32xbf16, #tpu.memory_space<vmem>>, %arg3: memref<1x32xf32, #tpu.memory_space<vmem>>, %arg4: memref<32x32xbf16, #tpu.memory_space<vmem>>) attributes {dimension_semantics = [#tpu.dimension_semantics<parallel>], iteration_bounds = array<i64: 1>, scalar_prefetch = 0 : i64, scratch_operands = 0 : i64, tpu.core_type = #tpu.core_type<tc>, window_params = [{transform_indices = @transform_0, window_bounds = array<i64: 32, 32>}, {pipeline_mode = #tpu.pipeline_mode<synchronous>, transform_indices = @transform_1, window_bounds = array<i64: 32, 32>}, {pipeline_mode = #tpu.pipeline_mode<synchronous>, transform_indices = @transform_2, window_bounds = array<i64: 1, 32>}, {transform_indices = @transform_3, window_bounds = array<i64: 32, 32>}]} {
    %c0 = arith.constant 0 : index
    %c0_0 = arith.constant 0 : index
    %0 = vector.load %arg1[%c0, %c0_0] : memref<32x32xbf16, #tpu.memory_space<vmem>>, vector<32x32xbf16>
    %c0_1 = arith.constant 0 : index
    %c0_2 = arith.constant 0 : index
    %1 = vector.load %arg2[%c0_1, %c0_2] : memref<32x32xbf16, #tpu.memory_space<vmem>>, vector<32x32xbf16>
    %cst = arith.constant dense<0.000000e+00> : vector<32x32xf32>
    %2 = tpu.matmul %0, %1, %cst {dimension_numbers = #tpu.dot_dimension_numbers<[1], [0], [0], [1], [0, 0, 1, 1], [], []>} : vector<32x32xbf16>, vector<32x32xbf16>, vector<32x32xf32> -> vector<32x32xf32>
    %c0_3 = arith.constant 0 : index
    %c0_4 = arith.constant 0 : index
    %3 = vector.load %arg3[%c0_3, %c0_4] : memref<1x32xf32, #tpu.memory_space<vmem>>, vector<1x32xf32>
    %4 = vector.broadcast %3 : vector<1x32xf32> to vector<32x32xf32>
    %5 = arith.addf %2, %4 : vector<32x32xf32>
    %6 = arith.truncf %5 : vector<32x32xf32> to vector<32x32xbf16>
    %c0_5 = arith.constant 0 : index
    %c0_6 = arith.constant 0 : index
    %7 = vector.load %arg4[%c0_5, %c0_6] : memref<32x32xbf16, #tpu.memory_space<vmem>>, vector<32x32xbf16>
    tpu.vector_store %arg4[%c0_5, %c0_6], %6 {strides = array<i32>} : memref<32x32xbf16, #tpu.memory_space<vmem>>, vector<32x32xbf16>,
    return
  }
  func.func @transform_0(%arg0: i32) -> (i32, i32) {
    %c0_i32 = arith.constant 0 : i32
    %c0_i32_0 = arith.constant 0 : i32
    return %arg0, %c0_i32 : i32, i32
  }
  func.func @transform_1(%arg0: i32) -> (i32, i32) {
    %c0_i32 = arith.constant 0 : i32
    %c0_i32_0 = arith.constant 0 : i32
    %c0_i32_1 = arith.constant 0 : i32
    return %c0_i32, %c0_i32_0 : i32, i32
  }
  func.func @transform_2(%arg0: i32) -> (i32, i32) {
    %c0_i32 = arith.constant 0 : i32
    %c0_i32_0 = arith.constant 0 : i32
    %c0_i32_1 = arith.constant 0 : i32
    return %c0_i32, %c0_i32_0 : i32, i32
  }
  func.func @transform_3(%arg0: i32) -> (i32, i32) {
    %c0_i32 = arith.constant 0 : i32
    %c0_i32_0 = arith.constant 0 : i32
    return %arg0, %c0_i32 : i32, i32
  }
}

</mosaic_0001>

<bundles_post_ra>
// kernel: tpu_custom_call.1
= control target key start
LH: loop header
LB: loop body
LE: loop exit
PB: predicated region body
PF: predicated region fallthrough
CT: control target
= control target key end

     0   :  { %8 = vsyncpa [#allocation3], 0  ;;  %s328_s0 = inlined_call_operand.hbm [shape: bf16[32,32], index: 0, kind: input, shape index: {}]   ;;  %s329_s1 = inlined_call_operand.hbm [shape: bf16[32,32], index: 1, kind: input, shape index: {}]   ;;  %s330_s2 = inlined_call_operand.vmem [shape: f32[1,32], index: 2, kind: input, shape index: {}]   ;;  %s331_s3 = inlined_call_operand.hbm [shape: bf16[32,32], index: 3, kind: output, shape index: {}]  }
   0x1   :  { %9 = vsyncpa [#allocation6], 0 }
   0x2   :  { %10 = vsyncpa [#allocation4], 0  ;;  %s278_s12 = smov [#allocation2]  }
   0x3   :  { %s16_s13 = sshll.u32 %s278_s12, 4  ;;  %s17_s13 = int_to_ptr.vmem [resolvable:$true] %s16_s13 }
   0x4   :  { %s220_s14 = scalar_lea.vmem %s17_s13, 256  ;;  %p225_p1 = scmp.lt.s32.totalorder %s17_s13, %s17_s13 }
   0x5   :  { %p221_p0 = scmp.ne.s32.totalorder %s17_s13, %s220_s14  ;;  %p226_p2 = scmp.lt.s32.totalorder %s220_s14, %s220_s14 }
   0x7   :  { %p227_p3 = por %p226_p2, %p225_p1 }
   0x9   :  { %p228_p4 = pnand %p227_p3, %p221_p0 }
   0xb   :  { %231 = shalt.err (!%p228_p4)
}
   0xc   :  { %s279_s15 = smov 64   ;;  %s280_s16 = smov 4  }
   0xd   :  { %22 = dma.hbm_to_vmem [thread:$0]  %s328_s0, 256, %s17_s13, [#allocation3], %s279_s15, %s279_s15, %s280_s16  }
   0xe   :  { %s281_s19 = smov [#allocation5]  }
   0xf   :  { %s28_s20 = sshll.u32 %s281_s19, 4  ;;  %s29_s20 = int_to_ptr.vmem [resolvable:$true] %s28_s20 }
  0x10   :  { %s240_s21 = scalar_lea.vmem %s29_s20, 256  ;;  %p245_p6 = scmp.lt.s32.totalorder %s29_s20, %s29_s20 }
  0x11   :  { %p241_p5 = scmp.ne.s32.totalorder %s29_s20, %s240_s21  ;;  %p246_p7 = scmp.lt.s32.totalorder %s240_s21, %s240_s21 }
  0x13   :  { %p247_p8 = por %p246_p7, %p245_p6 }
  0x15   :  { %p248_p9 = pnand %p247_p8, %p241_p5 }
  0x17   :  { %251 = shalt.err (!%p248_p9)
}
  0x18   :  { %34 = dma.hbm_to_vmem [thread:$0]  %s329_s1, 256, %s29_s20, [#allocation6], %s279_s15, %s279_s15, %s280_s16  }
  0x19   :  { %272 = dma.done.wait [#allocation3], 256  }
  0x1a   :  { %273 = vsyncadd [#allocation3], 4294967040 }
  0x1b   :  { %274 = dma.done.wait [#allocation6], 256  }
  0x1c   :  { %275 = vsyncadd [#allocation6], 4294967040  ;;  %v208_v0 = vld [vmem:[#allocation5 + $0x8] sm:$0xff]   ;;  %v209_v1 = vld [vmem:[#allocation5] sm:$0xff]   ;;  %vm81_vm0 = vcmask 261120   ;;  %vm153_vm1 = vcmask 257024  }
  0x1d   :  { %195 = vmatprep.subr.bf16.mxu0 %v208_v0  ;;  %v210_v2 = vld [vmem:[#allocation2] sm:$0xff]   ;;  %v211_v3 = vld [vmem:[#allocation2 + $0x8] sm:$0xff]   ;;  %s282_s1 = smov [#allocation7]  }
  0x1e   :  { %196 = vmatpush3.bf16.msra.mxu0 %v208_v0  ;;  %199 = vmatprep.mubr.msk.bf16.mxu0 %vm81_vm0, %v210_v2  ;;  %v176_v4 = vld [vmem:[%s330_s2] ss:$0 sm:$0xff]  ;;  %s163_s25 = sshll.u32 %s282_s1, 4  ;;  %s164_s25 = int_to_ptr.vmem [resolvable:$true] %s163_s25 }
  0x1f   :  { %197 = vmatprep.subr.bf16.mxu0 %v209_v1  ;;  %s252_s2 = scalar_lea.vmem %s164_s25, 256  ;;  %p257_p11 = scmp.lt.s32.totalorder %s164_s25, %s164_s25 }
  0x20   :  { %p253_p10 = scmp.ne.s32.totalorder %s164_s25, %s252_s2  ;;  %p258_p12 = scmp.lt.s32.totalorder %s252_s2, %s252_s2 }
  0x22   :  { %198 = vmatpush3.bf16.msra.mxu0 %v209_v1  ;;  %p259_p13 = por %p258_p12, %p257_p11 }
  0x24   :  { %p260_p0 = pnand %p259_p13, %p253_p10 }
  0x25   :  { %200 = vmatmul.mubr.msk.bf16.vlgmr.msra.gmra.mxu0 %vm81_vm0, %v211_v3 }
  0xe5   :  { %v201_v5 = vpop.f32.mrf.mxu0 }
  0xe6   :  { %v131_v6 = vadd.f32 %v201_v5, %v176_v4 }
  0xe7   :  { %v122_v7 = vpop.f32.mrf.mxu0 }
  0xe8   :  { %v189_v8 = vpack.c.bf16 %v131_v6, %v131_v6  ;;  %v123_v9 = vadd.f32 %v176_v4, %v122_v7 }
  0xe9   :  { %v202_v10 = vpop.f32.mrf.mxu0 }
  0xea   :  { %156 = vst.msk [vmem:[#allocation7 + $0x8] sm:$0xf] %vm153_vm1, %v189_v8  ;;  %v187_v11 = vpack.c.bf16 %v123_v9, %v123_v9  ;;  %v134_v12 = vadd.f32 %v202_v10, %v176_v4 }
  0xeb   :  { %v125_v13 = vpop.f32.mrf.mxu0 }
  0xec   :  { %154 = vst.msk [vmem:[#allocation7] sm:$0xf] %vm153_vm1, %v187_v11  ;;  %v190_v14 = vpack.c.bf16 %v134_v12, %v134_v12  ;;  %v126_v15 = vadd.f32 %v176_v4, %v125_v13 }
  0xee   :  { %157 = vst.msk [vmem:[#allocation7 + $0xc] sm:$0xf] %vm153_vm1, %v190_v14  ;;  %v188_v16 = vpack.c.bf16 %v126_v15, %v126_v15 }
  0xf0   :  { %155 = vst.msk [vmem:[#allocation7 + $0x4] sm:$0xf] %vm153_vm1, %v188_v16 }
  0xf1   :  { %263 = shalt.err (!%p260_p0)
}
  0xf2   :  { %169 = dma.vmem_to_hbm [thread:$0]  %s164_s25, 256, %s331_s3, [#allocation4], %s279_s15, %s279_s15, %s280_s16  }
  0xf3   :  { %276 = dma.done.wait [#allocation4], 256  }
  0xf4   :  { %277 = vsyncadd [#allocation4], 4294967040 }
  0xf5   :  { %173 = vsyncpa [#allocation3], 1 }
  0xf6   :  { %174 = vsyncpa [#allocation6], 1 }
  0xf7   :  { %175 = vsyncpa [#allocation4], 1 }

</bundles_post_ra>
